<compile_context>
chip_gen: v6e
topology: v6e:2x2x1
jax: 0.10.0
libtpu: 0.0.40
codegen_flags: <defaults>
</compile_context>

<pallas_src>
import functools

import jax
import jax.numpy as jnp
from jax.experimental import pallas as pl
from jax.experimental.pallas import tpu as pltpu


HALO_ROWS = 8  # one sublane tile; covers 2*pad = 4 halo rows for k=5


def _conv_rows_kernel(x_lo_ref, x_hi_ref, w_ref, b_ref, o_ref, *, tile_h, K):
    """One (batch, row-strip) grid step: im2row + a single MXU matmul.

    x_lo_ref : (1, tile_h, W*Cin)  rows [s*tile_h, (s+1)*tile_h) of padded x (bf16)
    x_hi_ref : (1, 8, W*Cin)       the 8 rows starting at (s+1)*tile_h (bf16);
                                   only the first 2*pad rows are consumed
    w_ref    : (K*W*Cin, W*Cout)   banded weights, kh folded into the
                                   contraction; output columns permuted to
                                   (i, c, w, j) PixelShuffle order (bf16)
    b_ref    : (1, W*Cout)         folded + permuted bias (f32)
    o_ref    : (1, tile_h, W*Cout) folded conv output (f32)
    """
    # Strip + bottom halo, bf16 throughout (no cast passes).
    x_all = jnp.concatenate([x_lo_ref[0], x_hi_ref[0]], axis=0)  # (tile_h+8, W*Cin)
    # im2row: tap kh contributes the rows shifted down by kh, laid out as the
    # kh-th lane slab of the contraction (matches wmat's row ordering).
    lhs = jnp.concatenate([x_all[kh:kh + tile_h, :] for kh in range(K)], axis=1)
    acc = jnp.dot(lhs, w_ref[...], preferred_element_type=jnp.float32)
    acc = acc + b_ref[...]          # f32 epilogue (v5e-friendly)
    o_ref[0] = acc.astype(o_ref.dtype)


def _lower_weights(w_oihw, W, pad, ratio, compute_dtype):
    """(Cout, Cin, K, K) -> (K*W*Cin, W*Cout) banded matrix + column perm.

    Row index  : kh*W*Cin + s*Cin + ci   (kh tap folded into the contraction)
    Col index  : permuted so the folded output lane order is (i, c, w, j),
                 making the PixelShuffle epilogue a coarse block transpose.
    The kw tap and the implicit W-direction zero padding are folded into the
    weights:  wmat[kh, s*Cin+ci, d*Cout+co] = w[co, ci, kh, s-d+pad] (else 0).
    """
    Cout, Cin, K, _ = w_oihw.shape
    w_kkio = jnp.transpose(w_oihw, (2, 3, 1, 0))              # (K, K, Cin, Cout)
    src = jnp.arange(W)[:, None]                              # source column s
    dst = jnp.arange(W)[None, :]                              # output column d
    kw = src - dst + pad                                      # (W, W)
    valid = ((kw >= 0) & (kw < K)).astype(w_kkio.dtype)
    kw_c = jnp.clip(kw, 0, K - 1)
    # blocks[kh, s, d, ci, co] = w_kkio[kh, kw_c[s,d], ci, co] * valid[s,d]
    blocks = w_kkio[:, kw_c] * valid[None, :, :, None, None]  # (K, W, W, Cin, Cout)
    wmat = jnp.transpose(blocks, (0, 1, 3, 2, 4)).reshape(K, W * Cin, W * Cout)

    # Column permutation: old col = d*Cout + (c*r*r + i*r + j)
    #                     new col = ((i*C + c)*W + d)*r + j
    r = ratio
    C = Cout // (r * r)
    ii = jnp.arange(r).reshape(r, 1, 1, 1)
    cc = jnp.arange(C).reshape(1, C, 1, 1)
    dd = jnp.arange(W).reshape(1, 1, W, 1)
    jj = jnp.arange(r).reshape(1, 1, 1, r)
    perm = (dd * Cout + cc * (r * r) + ii * r + jj).reshape(-1)  # perm[new] = old
    wmat = wmat[:, :, perm]
    return wmat.reshape(K * W * Cin, W * Cout).astype(compute_dtype), perm


def conv2d_fold_pallas(x_nchw, w_oihw, bias, *, kernel_size, ratio, tile_h=None,
                       compute_dtype=jnp.bfloat16):
    """Conv2d(padding=k//2, stride=1); returns the folded (N, H, W*Cout) output
    with lane order (i, c, w, j) ready for a cheap PixelShuffle epilogue."""
    N, Cin, H, W = x_nchw.shape
    Cout = w_oihw.shape[0]
    K = kernel_size
    assert K % 2 == 1 and K >= 3, "odd kernel_size >= 3 expected (module uses 5)"
    pad = K // 2
    assert 2 * pad <= HALO_ROWS, "8-row halo block assumes kernel_size <= 9"

    if tile_h is None:
        cands = [t for t in (256, 128, 64, 32, 16, 8) if H % t == 0]
        tile_h = cands[0] if cands else H
    assert H % tile_h == 0 and tile_h % HALO_ROWS == 0 and tile_h >= 2 * pad
    n_strips = H // tile_h

    wc_in = W * Cin
    wc_out = W * Cout

    # Layout glue (fused under jit into ~one pass over the small input):
    # NCHW -> (N, H, W*Cin), pad H so every strip's 8-row bottom-halo block is
    # fully in-bounds (top pad = pad zeros, bottom pad = 8 - pad zeros), bf16.
    x_rows = jnp.transpose(x_nchw, (0, 2, 3, 1)).reshape(N, H, wc_in)
    x_rows = jnp.pad(x_rows, ((0, 0), (pad, HALO_ROWS - pad), (0, 0)))
    x_rows = x_rows.astype(compute_dtype)                     # (N, H+8, W*Cin)

    wmat, perm = _lower_weights(w_oihw, W, pad, ratio, compute_dtype)
    b_fold = jnp.tile(bias.astype(jnp.float32), W)[perm].reshape(1, wc_out)

    # VMEM budget: double-buffered blocks + resident weights + in-kernel
    # im2row / accumulator temporaries, with 2x headroom.
    vmem_need = (
        2 * wmat.size * 2                 # banded weights (bf16, 2 buffers)
        + 2 * wc_out * 4                  # bias
        + 2 * tile_h * wc_in * 2          # x_lo blocks
        + 2 * HALO_ROWS * wc_in * 2       # x_hi halo blocks
        + 2 * tile_h * wc_out * 4         # output blocks
        + tile_h * K * wc_in * 2          # im2row LHS
        + 2 * tile_h * wc_out * 4         # f32 accumulator / epilogue
    )
    assert vmem_need < 40 * 1024 * 1024, (
        "banded-weight conv would exceed the VMEM budget at this size; tile "
        "the W*Cout columns of wmat on a third grid axis")
    vmem_limit = int(min(max(2 * vmem_need + (4 << 20), 16 << 20), 64 << 20))

    kernel = functools.partial(_conv_rows_kernel, tile_h=tile_h, K=K)

    out_fold = pl.pallas_call(
        kernel,
        out_shape=jax.ShapeDtypeStruct((N, H, wc_out), x_nchw.dtype),
        grid_spec=pltpu.PrefetchScalarGridSpec(
            num_scalar_prefetch=0,
            grid=(N, n_strips),
            in_specs=[
                # strip s of the H-padded activation
                pl.BlockSpec((1, tile_h, wc_in), lambda n, s: (n, s, 0)),
                # one sublane tile (8 rows) starting at (s+1)*tile_h: the halo
                pl.BlockSpec((1, HALO_ROWS, wc_in),
                             lambda n, s: (n, (s + 1) * (tile_h // HALO_ROWS), 0)),
                # banded weights / bias, resident across the grid
                pl.BlockSpec((K * wc_in, wc_out), lambda n, s: (0, 0)),
                pl.BlockSpec((1, wc_out), lambda n, s: (0, 0)),
            ],
            out_specs=pl.BlockSpec((1, tile_h, wc_out), lambda n, s: (n, s, 0)),
        ),
        compiler_params=pltpu.CompilerParams(
            dimension_semantics=("parallel", "parallel"),
            vmem_limit_bytes=vmem_limit,
        ),
    )(x_rows, x_rows, wmat, b_fold)
    return out_fold


@functools.partial(jax.jit, static_argnames=("kernel_size", "ratio", "tile_h"))
def conv_end_forward(x_nchw, w, b, *, kernel_size=5, ratio=2, tile_h=None):
    N, _, H, W = x_nchw.shape
    Cout = w.shape[0]
    r = ratio
    assert Cout % (r * r) == 0, "PixelShuffle needs out_channels % ratio^2 == 0"
    C = Cout // (r * r)
    y = conv2d_fold_pallas(x_nchw, w, b, kernel_size=kernel_size, ratio=ratio,
                           tile_h=tile_h)
    # Folded output lanes are already ordered (i, c, w, j): PixelShuffle +
    # NHWC->NCHW collapses into one coarse transpose with contiguous
    # (W*r)-length rows.
    y = y.reshape(N, H, r, C, W * r)
    y = jnp.transpose(y, (0, 3, 1, 2, 4))       # (N, C, H, i, W*r)
    return y.reshape(N, C, H * r, W * r)


# ----------------------------- self-check helpers ---------------------------

def _pixel_shuffle_nchw(y, r):
    N, Crr, H, W = y.shape
    C = Crr // (r * r)
    y = y.reshape(N, C, r, r, H, W)
    y = jnp.transpose(y, (0, 1, 4, 2, 5, 3))
    return y.reshape(N, C, H * r, W * r)


def _reference(x, w, b, *, kernel_size, ratio, compute_dtype=jnp.bfloat16):
    """XLA reference with the same bf16-operand / f32-accumulate numerics."""
    pad = kernel_size // 2
    y = jax.lax.conv_general_dilated(
        x.astype(compute_dtype), w.astype(compute_dtype),
        window_strides=(1, 1), padding=[(pad, pad), (pad, pad)],
        dimension_numbers=("NCHW", "OIHW", "NCHW"),
        preferred_element_type=jnp.float32)
    y = (y + b.reshape(1, -1, 1, 1)).astype(x.dtype)
    return _pixel_shuffle_nchw(y, ratio)


if __name__ == "__main__":
    # PixelShuffle(ratio=2) needs out_channels % ratio^2 == 0, so we use
    # out_channels=8 (the module default out_channels=3 would raise in
    # PyTorch as well).
    N, Cin, H, W = 2, 4, 16, 16
    Cout, K, ratio = 8, 5, 2

    key = jax.random.PRNGKey(0)
    kx, kw, kb = jax.random.split(key, 3)
    x = jax.random.normal(kx, (N, Cin, H, W), dtype=jnp.float32)
    w = jax.random.normal(kw, (Cout, Cin, K, K), dtype=jnp.float32) * 0.05
    b = jax.random.normal(kb, (Cout,), dtype=jnp.float32) * 0.1

    out = conv_end_forward(x, w, b, kernel_size=K, ratio=ratio)
    out = jax.block_until_ready(out)
    assert out.shape == (N, Cout // (ratio * ratio), H * ratio, W * ratio)

    # Numerical self-check vs. an XLA reference with identical bf16-operand /
    # f32-accumulation numerics (differences are accumulation-order only).
    ref = jax.block_until_ready(_reference(x, w, b, kernel_size=K, ratio=ratio))
    max_err = float(jnp.max(jnp.abs(out - ref)))
    assert max_err < 2e-2, f"mismatch vs reference: max abs err {max_err}"

    print("KERNEL_OK")
</pallas_src>

<mosaic_0001>
module attributes {stable_mosaic.version = 11 : i64} {
  func.func @_conv_rows_kernel(%arg0: i32, %arg1: i32, %arg2: memref<1x16x64xbf16, #tpu.memory_space<vmem>>, %arg3: memref<1x8x64xbf16, #tpu.memory_space<vmem>>, %arg4: memref<320x128xbf16, #tpu.memory_space<vmem>>, %arg5: memref<1x128xf32, #tpu.memory_space<vmem>>, %arg6: memref<1x16x128xf32, #tpu.memory_space<vmem>>) attributes {dimension_semantics = [#tpu.dimension_semantics<parallel>, #tpu.dimension_semantics<parallel>], iteration_bounds = array<i64: 2, 1>, scalar_prefetch = 0 : i64, scratch_operands = 0 : i64, tpu.core_type = #tpu.core_type<tc>, window_params = [{transform_indices = @transform_0, window_bounds = array<i64: 1, 16, 64>}, {transform_indices = @transform_1, window_bounds = array<i64: 1, 8, 64>}, {pipeline_mode = #tpu.pipeline_mode<synchronous>, transform_indices = @transform_2, window_bounds = array<i64: 320, 128>}, {pipeline_mode = #tpu.pipeline_mode<synchronous>, transform_indices = @transform_3, window_bounds = array<i64: 1, 128>}, {transform_indices = @transform_4, window_bounds = array<i64: 1, 16, 128>}]} {
    %c0 = arith.constant 0 : index
    %c0_0 = arith.constant 0 : index
    %c0_1 = arith.constant 0 : index
    %0 = vector.load %arg2[%c0, %c0_0, %c0_1] : memref<1x16x64xbf16, #tpu.memory_space<vmem>>, vector<1x16x64xbf16>
    %1 = vector.shape_cast %0 : vector<1x16x64xbf16> to vector<16x64xbf16>
    %c0_2 = arith.constant 0 : index
    %c0_3 = arith.constant 0 : index
    %c0_4 = arith.constant 0 : index
    %2 = vector.load %arg3[%c0_2, %c0_3, %c0_4] : memref<1x8x64xbf16, #tpu.memory_space<vmem>>, vector<1x8x64xbf16>
    %3 = vector.shape_cast %2 : vector<1x8x64xbf16> to vector<8x64xbf16>
    %4 = tpu.concatenate %1, %3 in 0 : vector<16x64xbf16>, vector<8x64xbf16> -> vector<24x64xbf16>
    %5 = vector.extract_strided_slice %4 {offsets = [0, 0], sizes = [16, 64], strides = [1, 1]} : vector<24x64xbf16> to vector<16x64xbf16>
    %6 = vector.extract_strided_slice %4 {offsets = [1, 0], sizes = [16, 64], strides = [1, 1]} : vector<24x64xbf16> to vector<16x64xbf16>
    %7 = vector.extract_strided_slice %4 {offsets = [2, 0], sizes = [16, 64], strides = [1, 1]} : vector<24x64xbf16> to vector<16x64xbf16>
    %8 = vector.extract_strided_slice %4 {offsets = [3, 0], sizes = [16, 64], strides = [1, 1]} : vector<24x64xbf16> to vector<16x64xbf16>
    %9 = vector.extract_strided_slice %4 {offsets = [4, 0], sizes = [16, 64], strides = [1, 1]} : vector<24x64xbf16> to vector<16x64xbf16>
    %10 = tpu.concatenate %5, %6, %7, %8, %9 in 1 : vector<16x64xbf16>, vector<16x64xbf16>, vector<16x64xbf16>, vector<16x64xbf16>, vector<16x64xbf16> -> vector<16x320xbf16>
    %c0_5 = arith.constant 0 : index
    %c0_6 = arith.constant 0 : index
    %11 = vector.load %arg4[%c0_5, %c0_6] : memref<320x128xbf16, #tpu.memory_space<vmem>>, vector<320x128xbf16>
    %cst = arith.constant dense<0.000000e+00> : vector<16x128xf32>
    %12 = tpu.matmul %10, %11, %cst {dimension_numbers = #tpu.dot_dimension_numbers<[1], [0], [0], [1], [0, 0, 1, 1], [], []>} : vector<16x320xbf16>, vector<320x128xbf16>, vector<16x128xf32> -> vector<16x128xf32>
    %c0_7 = arith.constant 0 : index
    %c0_8 = arith.constant 0 : index
    %13 = vector.load %arg5[%c0_7, %c0_8] : memref<1x128xf32, #tpu.memory_space<vmem>>, vector<1x128xf32>
    %14 = vector.broadcast %13 : vector<1x128xf32> to vector<16x128xf32>
    %15 = arith.addf %12, %14 : vector<16x128xf32>
    %c0_9 = arith.constant 0 : index
    %c0_10 = arith.constant 0 : index
    %c0_11 = arith.constant 0 : index
    %16 = vector.load %arg6[%c0_9, %c0_10, %c0_11] : memref<1x16x128xf32, #tpu.memory_space<vmem>>, vector<1x16x128xf32>
    %17 = vector.shape_cast %16 : vector<1x16x128xf32> to vector<16x128xf32>
    %18 = vector.shape_cast %15 : vector<16x128xf32> to vector<1x16x128xf32>
    tpu.vector_store %arg6[%c0_9, %c0_10, %c0_11], %18 {strides = array<i32>} : memref<1x16x128xf32, #tpu.memory_space<vmem>>, vector<1x16x128xf32>,
    return
  }
  func.func @transform_0(%arg0: i32, %arg1: i32) -> (i32, i32, i32) {
    %c0_i32 = arith.constant 0 : i32
    %c0_i32_0 = arith.constant 0 : i32
    return %arg0, %arg1, %c0_i32 : i32, i32, i32
  }
  func.func @transform_1(%arg0: i32, %arg1: i32) -> (i32, i32, i32) {
    %c1_i32 = arith.constant 1 : i32
    %0 = arith.addi %arg1, %c1_i32 : i32
    %c2_i32 = arith.constant 2 : i32
    %1 = arith.muli %0, %c2_i32 : i32
    %c0_i32 = arith.constant 0 : i32
    %c0_i32_0 = arith.constant 0 : i32
    return %arg0, %1, %c0_i32 : i32, i32, i32
  }
  func.func @transform_2(%arg0: i32, %arg1: i32) -> (i32, i32) {
    %c0_i32 = arith.constant 0 : i32
    %c0_i32_0 = arith.constant 0 : i32
    %c0_i32_1 = arith.constant 0 : i32
    return %c0_i32, %c0_i32_0 : i32, i32
  }
  func.func @transform_3(%arg0: i32, %arg1: i32) -> (i32, i32) {
    %c0_i32 = arith.constant 0 : i32
    %c0_i32_0 = arith.constant 0 : i32
    %c0_i32_1 = arith.constant 0 : i32
    return %c0_i32, %c0_i32_0 : i32, i32
  }
  func.func @transform_4(%arg0: i32, %arg1: i32) -> (i32, i32, i32) {
    %c0_i32 = arith.constant 0 : i32
    %c0_i32_0 = arith.constant 0 : i32
    return %arg0, %arg1, %c0_i32 : i32, i32, i32
  }
}

</mosaic_0001>

<bundles_post_ra>
// kernel: tile.8
= control target key start
LH: loop header
LB: loop body
LE: loop exit
PB: predicated region body
PF: predicated region fallthrough
CT: control target
= control target key end

     0   :  { %s28_s0 = inlined_call_operand.vmem [shape: f32[8], index: 0, kind: input, shape index: {}]   ;;  %s29_s1 = inlined_call_operand.vmem [shape: f32[16,8], index: 1, kind: output, shape index: {}]  }
   0x1   :  { %v4_v0 = vld [vmem:[%s28_s0] ss:$0 sm:$0xff] }
   0x2   :  { %5 = vst [vmem:[%s29_s1] sm:$0xff] %v4_v0  ;;  %8 = vst [vmem:[%s29_s1 + $0x8] sm:$0xff] %v4_v0 }

// kernel: tile.9
= control target key start
LH: loop header
LB: loop body
LE: loop exit
PB: predicated region body
PF: predicated region fallthrough
CT: control target
= control target key end

     0   :  { %s133_s10 = smov 120   ;;  %s134_s11 = smov 104   ;;  %vm3_vm0 = vcmask 64512   ;;  %vm9_vm1 = vcmask 1048512   ;;  %vm15_vm2 = vcmask 982912   ;;  %vm21_vm3 = vcmask 917312   ;;  %s209_s0 = inlined_call_operand.vmem [shape: f32[16,8], index: 0, kind: input, shape index: {}]   ;;  %s210_s1 = inlined_call_operand.vmem [shape: f32[128], index: 1, kind: output, shape index: {}]  }
   0x1   :  { %v103_v0 = vld [vmem:[%s209_s0 + $0xf] sm:$0x1]   ;;  %v105_v1 = vld [vmem:[%s209_s0 + $0xd] sm:$0x1]   ;;  %v104_v2 = vld [vmem:[%s209_s0 + $0xe] sm:$0x1]  }
   0x2   :  { %7 = vrot.lane.b32.xlu0 %v103_v0, %s133_s10  ;;  %19 = vrot.lane.b32.xlu1 %v105_v1, %s134_s11  ;;  %v106_v3 = vld [vmem:[%s209_s0 + $0xc] sm:$0x1]   ;;  %s135_s16 = smov 112   ;;  %s136_s17 = smov 96   ;;  %v107_v4 = vld [vmem:[%s209_s0 + $0xb] sm:$0x1]  }
   0x3   :  { %v108_v5 = vld [vmem:[%s209_s0 + $0xa] sm:$0x1]   ;;  %v2_v6 = vld [vmem:[%s209_s0] sm:$0x1]   ;;  %s137_s24 = smov 88   ;;  %s138_s25 = smov 80  }
   0x4   :  { %4 = vst.msk [vmem:[#allocation0] sm:$0x1] %vm3_vm0, %v2_v6   ;;  %v109_v7 = vld [vmem:[%s209_s0 + $0x9] sm:$0x1]   ;;  %v110_v8 = vld [vmem:[%s209_s0 + $0x8] sm:$0x1]  }
   0x5   :  { %s139_s30 = smov 72   ;;  %s140_s2 = smov 64   ;;  %v111_v9 = vld [vmem:[%s209_s0 + $0x7] sm:$0x1]   ;;  %v112_v10 = vld [vmem:[%s209_s0 + $0x6] sm:$0x1]  }
   0x6   :  { %13 = vrot.lane.b32.xlu0 %v104_v2, %s135_s16  ;;  %25 = vrot.lane.b32.xlu1 %v106_v3, %s136_s17  ;;  %s141_s7 = smov 56   ;;  %s142_s8 = smov 48   ;;  %v113_v11 = vld [vmem:[%s209_s0 + $0x5] sm:$0x1]   ;;  %v114_v12 = vld [vmem:[%s209_s0 + $0x4] sm:$0x1]  }
   0x7   :  { %s143_s13 = smov 40   ;;  %s144_s14 = smov 32   ;;  %v115_v13 = vld [vmem:[%s209_s0 + $0x3] sm:$0x1]   ;;  %v116_v14 = vld [vmem:[%s209_s0 + $0x2] sm:$0x1]  }
   0x8   :  { %s145_s19 = smov 24   ;;  %s146_s20 = smov 16   ;;  %v117_v15 = vld [vmem:[%s209_s0 + $0x1] sm:$0x1]   ;;  %vm27_vm4 = vcmask 851712   ;;  %vm33_vm5 = vcmask 786112  }
   0x9   :  { %s147_s0 = smov 8   ;;  %vm39_vm6 = vcmask 720512   ;;  %vm45_vm7 = vcmask 654912   ;;  %vm51_vm8 = vcmask 589312   ;;  %vm57_vm9 = vcmask 523712  }
   0xa   :  { %31 = vrot.lane.b32.xlu0 %v107_v4, %s137_s24  ;;  %37 = vrot.lane.b32.xlu1 %v108_v5, %s138_s25  ;;  %vm63_vm10 = vcmask 458112   ;;  %vm69_vm11 = vcmask 392512   ;;  %vm75_vm12 = vcmask 326912   ;;  %vm81_vm13 = vcmask 261312  }
   0xb   :  { %vm87_vm14 = vcmask 195712   ;;  %vm93_vm15 = vcmask 130112  }
   0xe   :  { %43 = vrot.lane.b32.xlu0 %v109_v7, %s139_s30  ;;  %49 = vrot.lane.b32.xlu1 %v110_v8, %s140_s2 }
  0x12   :  { %55 = vrot.lane.b32.xlu0 %v111_v9, %s141_s7  ;;  %61 = vrot.lane.b32.xlu1 %v112_v10, %s142_s8 }
  0x16   :  { %67 = vrot.lane.b32.xlu0 %v113_v11, %s143_s13  ;;  %73 = vrot.lane.b32.xlu1 %v114_v12, %s144_s14 }
  0x1a   :  { %79 = vrot.lane.b32.xlu0 %v115_v13, %s145_s19  ;;  %85 = vrot.lane.b32.xlu1 %v116_v14, %s146_s20 }
  0x1e   :  { %91 = vrot.lane.b32.xlu0 %v117_v15, %s147_s0 }
  0x74   :  { %v8_v16 = vpop.permute.xlu0 %7   ;;  %v20_v17 = vpop.permute.xlu1 %19  }
  0x75   :  { %10 = vst.msk [vmem:[#allocation0] sm:$0x1] %vm9_vm1, %v8_v16  }
  0x78   :  { %v14_v18 = vpop.permute.xlu0 %13   ;;  %v26_v19 = vpop.permute.xlu1 %25  }
  0x79   :  { %16 = vst.msk [vmem:[#allocation0] sm:$0x1] %vm15_vm2, %v14_v18  }
  0x7a   :  { %22 = vst.msk [vmem:[#allocation0] sm:$0x1] %vm21_vm3, %v20_v17  }
  0x7b   :  { %28 = vst.msk [vmem:[#allocation0] sm:$0x1] %vm27_vm4, %v26_v19  }
  0x7c   :  { %v32_v20 = vpop.permute.xlu0 %31   ;;  %v38_v21 = vpop.permute.xlu1 %37  }
  0x7d   :  { %34 = vst.msk [vmem:[#allocation0] sm:$0x1] %vm33_vm5, %v32_v20  }
  0x7e   :  { %40 = vst.msk [vmem:[#allocation0] sm:$0x1] %vm39_vm6, %v38_v21  }
  0x80   :  { %v44_v22 = vpop.permute.xlu0 %43   ;;  %v50_v23 = vpop.permute.xlu1 %49  }
  0x81   :  { %46 = vst.msk [vmem:[#allocation0] sm:$0x1] %vm45_vm7, %v44_v22  }
  0x82   :  { %52 = vst.msk [vmem:[#allocation0] sm:$0x1] %vm51_vm8, %v50_v23  }
  0x84   :  { %v56_v24 = vpop.permute.xlu0 %55   ;;  %v62_v25 = vpop.permute.xlu1 %61  }
  0x85   :  { %58 = vst.msk [vmem:[#allocation0] sm:$0x1] %vm57_vm9, %v56_v24  }
  0x86   :  { %64 = vst.msk [vmem:[#allocation0] sm:$0x1] %vm63_vm10, %v62_v25  }
  0x88   :  { %v68_v26 = vpop.permute.xlu0 %67   ;;  %v74_v27 = vpop.permute.xlu1 %73  }
  0x89   :  { %70 = vst.msk [vmem:[#allocation0] sm:$0x1] %vm69_vm11, %v68_v26  }
  0x8a   :  { %76 = vst.msk [vmem:[#allocation0] sm:$0x1] %vm75_vm12, %v74_v27  }
  0x8c   :  { %v80_v28 = vpop.permute.xlu0 %79   ;;  %v86_v29 = vpop.permute.xlu1 %85  }
  0x8d   :  { %82 = vst.msk [vmem:[#allocation0] sm:$0x1] %vm81_vm13, %v80_v28  }
  0x8e   :  { %88 = vst.msk [vmem:[#allocation0] sm:$0x1] %vm87_vm14, %v86_v29  }
  0x90   :  { %v92_v30 = vpop.permute.xlu0 %91  }
  0x91   :  { %94 = vst.msk [vmem:[#allocation0] sm:$0x1] %vm93_vm15, %v92_v30  }
  0x98   :  { %v99_v31 = vld [vmem:[#allocation0] sm:$0x1] }
  0x99   :  { %102 = vst [vmem:[%s210_s1] sm:$0x1] %v99_v31 }

// kernel: conv_end_forward.1
= control target key start
LH: loop header
LB: loop body
LE: loop exit
PB: predicated region body
PF: predicated region fallthrough
CT: control target
= control target key end

     0   :  { %s893_s15 = smov 0   ;;  %s895_s16 = smov 0   ;;  %s1016_s0 = inlined_call_operand.vmem [shape: bf16[2,24,64], index: 0, kind: input, shape index: {}, may-alias: {0,1}]   ;;  %s1017_s1 = inlined_call_operand.vmem [shape: bf16[2,24,64], index: 1, kind: input, shape index: {}, may-alias: {0,1}]   ;;  %s1018_s2 = inlined_call_operand.vmem [shape: bf16[320,128], index: 2, kind: input, shape index: {}]   ;;  %s1019_s3 = inlined_call_operand.vmem [shape: f32[1,128], index: 3, kind: input, shape index: {}]   ;;  %s1020_s4 = inlined_call_operand.vmem [shape: f32[2,16,128], index: 4, kind: output, shape index: {}]  }
   0x1   :  { %s897_s17 = smov 0  }
   0x2 LB: > { %s26_s18 = sadd.s32 1, %s859_s16  ;;  %p718_p0 = scmp.ge.s32.totalorder %s863_s17, 1  ;;  %s863_s17 = sphi %s897_s17, %s14_s17   ;;  %s859_s16 = sphi %s895_s16, %s1022_s16   ;;  %s855_s15 = sphi %s893_s15, %s1021_s15  }
   0x3   : > { %p28_p1 = scmp.ge.s32.totalorder %s26_s18, 2  ;;  %p214_p2 = scmp.lt.s32.totalorder %s863_s17, 3 }
   0x5   : > { %s1024_s18 = smov (%p28_p1, %s26_s18), 0  ;;  %p215_p3 = pnand %p718_p0, %p214_p2 }
   0x6   : > { %p267_p4 = scmp.lt.s32.totalorder (!%p215_p3), %s855_s15, 1  ;;  %s866_s27 = smov (!%p215_p3), 64  }
   0x7   : > { %218 = sbr.rel (%p215_p3) target bundleno = 351 (0x15f), region = 36 }
   0xc   : > { %v821_v0 = vld [vmem:[%s1018_s2 + $0x78] sm:$0xff]   ;;  %s1026_s15 = smov (!%p267_p4, %s855_s15), 1  ;;  %v865_v2 = vmov 0.0   ;;  %v823_v3 = vld [vmem:[%s1018_s2 + $0x70] sm:$0xff]   ;;  %vm331_vm0 = vsmask.f32 6400 }
   0xd   : > { %v822_v1 = vld [vmem:[%s1018_s2 + $0x38] sm:$0xff]   ;;  %778 = vmatprep.subr.bf16.mxu1 %v865_v2  ;;  %751 = vmatprep.subr.bf16.mxu0 %v821_v0  ;;  %s790_s25 = smul.u32 12, %s1026_s15  ;;  %v824_v4 = vld [vmem:[%s1018_s2 + $0x30] sm:$0xff]   ;;  %v825_v5 = vld [vmem:[%s1018_s2 + $0x68] sm:$0xff]   ;;  %vm311_vm1 = vsmask.f32 7424 }
   0xe   : > { %752 = vmatpush3.bf16.msra.mxu0 %v822_v1  ;;  %v826_v6 = vld [vmem:[%s1018_s2 + $0x28] sm:$0xff]   ;;  %v827_v13 = vld [vmem:[%s1018_s2 + $0x60] sm:$0xff]   ;;  %v829_v21 = vld [vmem:[%s1018_s2 + $0x58] sm:$0xff]   ;;  %vm867_vm2 = vmmov 0   ;;  %vm343_vm3 = vcmask 1045504   ;;  %vm347_vm4 = vcmask 523264  }
   0xf   : > { %753 = vmatprep.subr.bf16.mxu0 %v823_v3  ;;  %s274_s6 = scalar_lea.vmem %s1016_s0, %s790_s25  ;;  %s749_s7 = sadd.s32 8, %s790_s25  ;;  %v828_v20 = vld [vmem:[%s1018_s2 + $0x20] sm:$0xff]   ;;  %v831_v25 = vld [vmem:[%s1018_s2 + $0x98] sm:$0xff]   ;;  %v832_v28 = vld [vmem:[%s1018_s2 + $0x50] sm:$0xff]   ;;  %786 = vmatprep.mubr.msk.bf16.mxu1 %vm867_vm2, %v865_v2  ;;  %vm327_vm5 = vcmask 1046528  }
  0x10   : > { %s289_s12 = scalar_lea.vmem %s1017_s1, %s749_s7  ;;  %v939_v7 = vld [vmem:[%s274_s6] sm:$0xff]   ;;  %v830_v27 = vld [vmem:[%s1018_s2 + $0x18] sm:$0xff]   ;;  %779 = vmatpush3.bf16.msra.mxu1 %v831_v25  ;;  %v834_v30 = vld [vmem:[%s1018_s2 + $0x90] sm:$0xff]   ;;  %s750_s26 = sshll.u32 %s1026_s15, 4 }
  0x11   : > { %v941_v8 = vld [vmem:[%s289_s12] sm:$0xf]  ;;  %v313_v9 = vshrl.u32 %v939_v7, 16  ;;  %v315_v10 = vshll.u32 %v939_v7, 16  ;;  %780 = vmatprep.subr.bf16.mxu1 %v865_v2  ;;  %v833_v31 = vld [vmem:[%s1018_s2 + $0x10] sm:$0xff]   ;;  %v835_v32 = vld [vmem:[%s1018_s2 + $0x48] sm:$0xff]   ;;  %s300_s29 = scalar_lea.vmem %s1020_s4, %s750_s26 }
  0x12   : > { %754 = vmatpush3.bf16.msra.mxu0 %v824_v4  ;;  %v320_v11 = vshll.u32 %v941_v8, 16  ;;  %v335_v12 = vshrl.u32 %v941_v8, 16  ;;  %v837_v33 = vld [vmem:[%s1018_s2 + $0x88] sm:$0xff]   ;;  %v838_v35 = vld [vmem:[%s1018_s2 + $0x40] sm:$0xff]   ;;  %v344_v37 = vrot.slane %v939_v7, 2  ;;  %v345_v38 = vrot.slane %v941_v8, 2 }
  0x13   : > { %755 = vmatprep.subr.bf16.mxu0 %v825_v5  ;;  %v332_v14 = vrot.slane %v313_v9, 1  ;;  %v333_v15 = vrot.slane %v315_v10, 2  ;;  %v317_v18 = vrot.slane %v315_v10, 1  ;;  %v836_v34 = vld [vmem:[%s1018_s2 + $0x8] sm:$0xff]   ;;  %v840_v36 = vld [vmem:[%s1018_s2 + $0x80] sm:$0xff]   ;;  %v328_v41 = vrot.slane %v939_v7, 1 }
  0x14   : > { %v337_v16 = vrot.slane %v335_v12, 1  ;;  %v338_v17 = vrot.slane %v320_v11, 2  ;;  %v322_v19 = vrot.slane %v320_v11, 1  ;;  %781 = vmatpush3.bf16.msra.mxu1 %v834_v30  ;;  %v839_v39 = vld [vmem:[%s1018_s2] sm:$0xff]   ;;  %v346_v40 = vsel %vm343_vm3, %v344_v37, %v345_v38 }
  0x15   : > { %v334_v22 = vor.u32 %v333_v15, %v332_v14  ;;  %v318_v24 = vor.u32 %v317_v18, %v313_v9  ;;  %782 = vmatprep.subr.bf16.mxu1 %v865_v2  ;;  %v329_v42 = vrot.slane %v941_v8, 1  ;;  %v724_v53 = vld [vmem:[%s1019_s3] ss:$0 sm:$0xff] }
  0x16   : > { %756 = vmatpush3.bf16.msra.mxu0 %v826_v6  ;;  %v339_v23 = vor.u32 %v338_v17, %v337_v16 }
  0x17   : > { %757 = vmatprep.subr.bf16.mxu0 %v827_v13  ;;  %v323_v29 = vsel %vm311_vm1, %v318_v24, %v322_v19  ;;  %v330_v43 = vsel %vm327_vm5, %v328_v41, %v329_v42 }
  0x18   : > { %v340_v26 = vsel %vm331_vm0, %v334_v22, %v339_v23  ;;  %783 = vmatpush3.bf16.msra.mxu1 %v837_v33 }
  0x19   : > { %341 = vrot.lane.b32.xlu0 %v340_v26, %s866_s27  ;;  %784 = vmatprep.subr.bf16.mxu1 %v865_v2 }
  0x1a   : > { %758 = vmatpush3.bf16.msra.mxu0 %v828_v20 }
  0x1b   : > { %759 = vmatprep.subr.bf16.mxu0 %v829_v21 }
  0x1c   : > { %785 = vmatpush3.bf16.msra.mxu1 %v840_v36 }
  0x1d   : > { %324 = vrot.lane.b32.xlu0 %v323_v29, %s866_s27 }
  0x1e   : > { %760 = vmatpush3.bf16.msra.mxu0 %v830_v27 }
  0x1f   : > { %761 = vmatprep.subr.bf16.mxu0 %v832_v28  ;;  %787 = vmatmul.mubr.msk.bf16.vlgmr.msra.gmra.mxu1 %vm347_vm4, %v346_v40 }
  0x22   : > { %762 = vmatpush3.bf16.msra.mxu0 %v833_v31 }
  0x23   : > { %763 = vmatprep.subr.bf16.mxu0 %v835_v32 }
  0x26   : > { %764 = vmatpush3.bf16.msra.mxu0 %v836_v34 }
  0x27   : > { %765 = vmatprep.subr.bf16.mxu0 %v838_v35 }
  0x2a   : > { %766 = vmatpush3.bf16.msra.mxu0 %v839_v39 }
  0x8b   : > { %v342_v44 = vpop.permute.xlu0 %341 }
  0x8c   : > { %v353_v45 = vsel %vm347_vm4, %v330_v43, %v342_v44 }
  0x8d   : > { %557 = vmatprep.mubr.bf16.mxu0 %v353_v45 }
  0x8f   : > { %v325_v46 = vpop.permute.xlu0 %324 }
  0x90   : > { %v349_v47 = vsel %vm347_vm4, %v939_v7, %v325_v46 }
  0x91   : > { %558 = vmatmul.mubr.bf16.vlgmr.msra.gmra.mxu0 %v349_v47 }
  0xdf   : > { %v600_v48 = vpop.f32.mrf.mxu1 }
  0xe1   : > { %v788_v49 = vpop.f32.mrf.mxu1 }
  0xe3   : > { %v603_v50 = vpop.f32.mrf.mxu1 }
  0xe5   : > { %v789_v51 = vpop.f32.mrf.mxu1 }
 0x151   : > { %v767_v52 = vpop.f32.mrf.mxu0 }
 0x153   : > { %v768_v54 = vpop.f32.mrf.mxu0 }
 0x154   : > { %v769_v55 = vadd.f32 %v768_v54, %v767_v52 }
 0x155   : > { %v770_v56 = vpop.f32.mrf.mxu0 }
 0x156   : > { %v560_v57 = vadd.f32 %v769_v55, %v724_v53 }
 0x157   : > { %v771_v58 = vpop.f32.mrf.mxu0 }
 0x158   : > { %v601_v59 = vadd.f32 %v600_v48, %v560_v57  ;;  %v772_v60 = vadd.f32 %v771_v58, %v770_v56 }
 0x15a   : > { %607 = vst [vmem:[%s300_s29] sm:$0xff] %v601_v59  ;;  %v563_v61 = vadd.f32 %v772_v60, %v724_v53 }
 0x15c   : > { %v604_v62 = vadd.f32 %v603_v50, %v563_v61 }
 0x15e   : > { %608 = vst [vmem:[%s300_s29 + $0x8] sm:$0xff] %v604_v62 }
 0x15f PF: > { %s14_s17 = sadd.s32 1, %s863_s17   ;;  %s1021_s15 = smov %s859_s16 }
 0x160   : > { %p11_p5 = scmp.ge.s32.totalorder %s14_s17, 4   ;;  %s1022_s16 = smov %s1024_s18 }
 0x162   :  { %13 = sbr.rel (!%p11_p5) target bundleno = 2 (0x2), region = 69 }

</bundles_post_ra>
